<compile_context>
chip_gen: v7x
topology: tpu7x:2x2x1
jax: 0.10.0
libtpu: 0.0.40
codegen_flags: <defaults>
</compile_context>

<pallas_src>
import jax
import jax.numpy as jnp
from jax.experimental import pallas as pl
from jax.experimental.pallas import tpu as pltpu


def _frozen_bn_kernel(x_ref, scale_ref, bias_ref, o_ref):
    # x_ref, o_ref:        (r_block, hw_block)
    # scale_ref, bias_ref: (r_block, 1) float32, broadcast along lanes
    o_ref[...] = (x_ref[...] * scale_ref[...] + bias_ref[...]).astype(o_ref.dtype)


_TARGET_TILE_BYTES = 2 * 1024 * 1024   # ~2 MiB tiles: good DMA amortization,
                                        # safe on v5e(16 MiB scoped)/v7x(64 MiB).


def _pick_tiles(rows, hw, itemsize):
    """Pick (r_block, hw_block): byte-sized ~2 MiB tiles, sublane-aligned row
    blocks, lane blocks that are a multiple of 128 or the full extent."""
    sub = max(8, 32 // itemsize)            # 8 f32 / 16 bf16 / 32 int8
    hw_cap = (32 * 1024) // itemsize        # <= 32 KiB of lanes per row chunk

    if hw <= hw_cap:
        hw_block = hw                       # full extent: one contiguous run/row
    else:
        hw_block = (hw_cap // 128) * 128    # multiple of 128 (unmasked stores)

    r_target = max(sub, _TARGET_TILE_BYTES // (hw_block * itemsize))
    if rows <= r_target:
        r_block = rows                      # full extent (any size is legal)
    else:
        r_block = max(sub, (r_target // sub) * sub)
    return r_block, hw_block


def caffe_frozen_batchnorm2d(x, weight, bias, running_mean, running_var,
                             *, r_block=None, hw_block=None):
    """Forward pass of CaffeFrozenBatchNorm2d for NCHW input x."""
    N, C, H, W = x.shape
    HW = H * W
    rows = N * C
    itemsize = jnp.dtype(x.dtype).itemsize

    # Per-channel affine params in f32 (no eps in rsqrt, matching the module).
    scale_c = (weight.astype(jnp.float32)
               * jax.lax.rsqrt(running_var.astype(jnp.float32)))          # (C,)
    bias_c = bias.astype(jnp.float32) - running_mean.astype(jnp.float32) * scale_c

    # One row per (n, c): row r uses channel r % C -> tile C-vector N times.
    scale_rows = jnp.tile(scale_c, N).reshape(rows, 1)                    # (N*C, 1)
    bias_rows = jnp.tile(bias_c, N).reshape(rows, 1)

    # Flat, layout-preserving view; no padding, no post-slice.
    x2 = x.reshape(rows, HW)

    rb, hb = _pick_tiles(rows, HW, itemsize)
    if r_block is not None:
        rb = r_block
    if hw_block is not None:
        hb = hw_block

    grid = (pl.cdiv(rows, rb), pl.cdiv(HW, hb))
    n_steps = grid[0] * grid[1]

    x_spec_kwargs = {}
    if n_steps >= 3:
        # Pipeline is pure DMA (one vmul + one vadd per vreg); a third input
        # buffer hides DMA issue latency at block boundaries.  Output stays at
        # the default double buffer so v5e's scoped VMEM budget is never tight.
        x_spec_kwargs["pipeline_mode"] = pl.Buffered(3)

    out2 = pl.pallas_call(
        _frozen_bn_kernel,
        out_shape=jax.ShapeDtypeStruct((rows, HW), x.dtype),
        grid_spec=pltpu.PrefetchScalarGridSpec(
            num_scalar_prefetch=0,
            grid=grid,
            in_specs=[
                # x: (row-block, hw-block) tiles.
                pl.BlockSpec((rb, hb), lambda r, h: (r, h), **x_spec_kwargs),
                # scale / bias: same (rb, 1) block reused across all hw blocks.
                pl.BlockSpec((rb, 1), lambda r, h: (r, 0)),
                pl.BlockSpec((rb, 1), lambda r, h: (r, 0)),
            ],
            out_specs=pl.BlockSpec((rb, hb), lambda r, h: (r, h)),
        ),
        compiler_params=pltpu.CompilerParams(
            dimension_semantics=("parallel", "parallel"),
            vmem_limit_bytes=32 * 1024 * 1024),
    )(x2, scale_rows, bias_rows)

    return out2.reshape(N, C, H, W)


def _reference(x, weight, bias, running_mean, running_var):
    scale = weight * jax.lax.rsqrt(running_var)
    b = bias - running_mean * scale
    return x * scale.reshape(1, -1, 1, 1) + b.reshape(1, -1, 1, 1)


if __name__ == "__main__":
    key = jax.random.PRNGKey(0)
    kx, kw, kb, km, kv = jax.random.split(key, 5)

    def make_params(C):
        weight = 1.0 + 0.1 * jax.random.normal(kw, (C,), dtype=jnp.float32)
        bias = 0.1 * jax.random.normal(kb, (C,), dtype=jnp.float32)
        running_mean = 0.05 * jax.random.normal(km, (C,), dtype=jnp.float32)
        running_var = 1.0 + 0.1 * jax.random.uniform(kv, (C,), dtype=jnp.float32)
        return weight, bias, running_mean, running_var

    # 1) Base small shape (N=2, C=4, 16x16), f32, auto tiles (single block).
    N, C, H, W = 2, 4, 16, 16
    w_, b_, m_, v_ = make_params(C)
    x = jax.random.normal(kx, (N, C, H, W), dtype=jnp.float32)
    out = jax.block_until_ready(caffe_frozen_batchnorm2d(x, w_, b_, m_, v_))
    assert jnp.allclose(out, _reference(x, w_, b_, m_, v_), atol=1e-5, rtol=1e-5)

    # 2) HW = 49 (not a multiple of 128): full-extent lane block, no pad/slice.
    x7 = jax.random.normal(kx, (N, C, 7, 7), dtype=jnp.float32)
    out7 = jax.block_until_ready(caffe_frozen_batchnorm2d(x7, w_, b_, m_, v_))
    assert jnp.allclose(out7, _reference(x7, w_, b_, m_, v_), atol=1e-5, rtol=1e-5)

    # 3) Forced tiling with ragged tail blocks on BOTH axes (rows=12 / rb=8,
    #    HW=196 / hb=128) -> exercises masked tail stores and Buffered(3).
    C3 = 6
    w3, b3, m3, v3 = make_params(C3)
    x3 = jax.random.normal(kx, (2, C3, 14, 14), dtype=jnp.float32)
    out3 = jax.block_until_ready(
        caffe_frozen_batchnorm2d(x3, w3, b3, m3, v3, r_block=8, hw_block=128))
    assert jnp.allclose(out3, _reference(x3, w3, b3, m3, v3), atol=1e-5, rtol=1e-5)

    # 4) bf16 input: affine computed in f32, cast back to bf16.
    xb = jax.random.normal(kx, (N, C, H, W), dtype=jnp.bfloat16)
    outb = jax.block_until_ready(caffe_frozen_batchnorm2d(xb, w_, b_, m_, v_))
    expb = _reference(xb.astype(jnp.float32), w_, b_, m_, v_)
    assert jnp.allclose(outb.astype(jnp.float32), expb, atol=2e-2, rtol=2e-2)

    print("KERNEL_OK")
</pallas_src>

<mosaic_0001>
module attributes {stable_mosaic.version = 11 : i64} {
  func.func @_frozen_bn_kernel(%arg0: i32, %arg1: i32, %arg2: memref<8x256xf32, #tpu.memory_space<vmem>>, %arg3: memref<8x1xf32, #tpu.memory_space<vmem>>, %arg4: memref<8x1xf32, #tpu.memory_space<vmem>>, %arg5: memref<8x256xf32, #tpu.memory_space<vmem>>) attributes {dimension_semantics = [#tpu.dimension_semantics<parallel>, #tpu.dimension_semantics<parallel>], iteration_bounds = array<i64: 1, 1>, scalar_prefetch = 0 : i64, scratch_operands = 0 : i64, tpu.core_type = #tpu.core_type<tc>, window_params = [{transform_indices = @transform_0, window_bounds = array<i64: 8, 256>}, {transform_indices = @transform_1, window_bounds = array<i64: 8, 1>}, {transform_indices = @transform_2, window_bounds = array<i64: 8, 1>}, {transform_indices = @transform_3, window_bounds = array<i64: 8, 256>}]} {
    %c0 = arith.constant 0 : index
    %c0_0 = arith.constant 0 : index
    %0 = vector.load %arg2[%c0, %c0_0] : memref<8x256xf32, #tpu.memory_space<vmem>>, vector<8x256xf32>
    %c0_1 = arith.constant 0 : index
    %c0_2 = arith.constant 0 : index
    %1 = vector.load %arg3[%c0_1, %c0_2] : memref<8x1xf32, #tpu.memory_space<vmem>>, vector<8x1xf32>
    %2 = vector.broadcast %1 : vector<8x1xf32> to vector<8x256xf32>
    %3 = arith.mulf %0, %2 : vector<8x256xf32>
    %c0_3 = arith.constant 0 : index
    %c0_4 = arith.constant 0 : index
    %4 = vector.load %arg4[%c0_3, %c0_4] : memref<8x1xf32, #tpu.memory_space<vmem>>, vector<8x1xf32>
    %5 = vector.broadcast %4 : vector<8x1xf32> to vector<8x256xf32>
    %6 = arith.addf %3, %5 : vector<8x256xf32>
    %c0_5 = arith.constant 0 : index
    %c0_6 = arith.constant 0 : index
    %7 = vector.load %arg5[%c0_5, %c0_6] : memref<8x256xf32, #tpu.memory_space<vmem>>, vector<8x256xf32>
    tpu.vector_store %arg5[%c0_5, %c0_6], %6 {strides = array<i32>} : memref<8x256xf32, #tpu.memory_space<vmem>>, vector<8x256xf32>,
    return
  }
  func.func @transform_0(%arg0: i32, %arg1: i32) -> (i32, i32) {
    %c0_i32 = arith.constant 0 : i32
    return %arg0, %arg1 : i32, i32
  }
  func.func @transform_1(%arg0: i32, %arg1: i32) -> (i32, i32) {
    %c0_i32 = arith.constant 0 : i32
    %c0_i32_0 = arith.constant 0 : i32
    return %arg0, %c0_i32 : i32, i32
  }
  func.func @transform_2(%arg0: i32, %arg1: i32) -> (i32, i32) {
    %c0_i32 = arith.constant 0 : i32
    %c0_i32_0 = arith.constant 0 : i32
    return %arg0, %c0_i32 : i32, i32
  }
  func.func @transform_3(%arg0: i32, %arg1: i32) -> (i32, i32) {
    %c0_i32 = arith.constant 0 : i32
    return %arg0, %arg1 : i32, i32
  }
}

</mosaic_0001>

<bundles_post_ra>
// kernel: tpu_custom_call.1
= control target key start
LH: loop header
LB: loop body
LE: loop exit
PB: predicated region body
PF: predicated region fallthrough
CT: control target
= control target key end

     0   :  { %s122_s0 = inlined_call_operand.vmem [shape: f32[8,256], index: 0, kind: input, shape index: {}]   ;;  %s123_s1 = inlined_call_operand.vmem [shape: f32[8,1], index: 1, kind: input, shape index: {}]   ;;  %s124_s2 = inlined_call_operand.vmem [shape: f32[8,1], index: 2, kind: input, shape index: {}]   ;;  %s125_s3 = inlined_call_operand.hbm [shape: f32[8,256], index: 3, kind: output, shape index: {}]  }
   0x1   :  { %v17_v0 = vld [vmem:[%s123_s1] sm:$0xff] }
   0x2   :  { %8 = vsyncpa [#allocation3], 0  ;;  %v76_v1 = vmov 0   ;;  %v25_v2 = vld [vmem:[%s124_s2] sm:$0xff]  ;;  %v16_v5 = vld [vmem:[%s122_s0 + $0x8] sm:$0xff]  ;;  %s77_s20 = smov [#allocation2]  }
   0x3   :  { %51 = vset.pattern.permute.xlu0 %v76_v1  ;;  %v15_v4 = vld [vmem:[%s122_s0] sm:$0xff]  ;;  %s41_s1 = sshll.u32 %s77_s20, 4  ;;  %s42_s1 = int_to_ptr.vmem [resolvable:$true] %s41_s1 }
   0x4   :  { %20 = vperm.xlu0 %51, %v17_v0   ;;  %s52_s2 = scalar_lea.vmem %s42_s1, 256  ;;  %p57_p1 = scmp.lt.s32.totalorder %s42_s1, %s42_s1 }
   0x5   :  { %p53_p0 = scmp.ne.s32.totalorder %s42_s1, %s52_s2  ;;  %p58_p2 = scmp.lt.s32.totalorder %s52_s2, %s52_s2 }
   0x7   :  { %p59_p3 = por %p58_p2, %p57_p1 }
   0x8   :  { %28 = vperm.xlu0 %51, %v25_v2  }
   0x9   :  { %p60_p4 = pnand %p59_p3, %p53_p0 }
  0x83   :  { %v21_v3 = vpop.permute.xlu0 %20 }
  0x84   :  { %v23_v6 = vmul.f32 %v21_v3, %v15_v4  ;;  %v24_v7 = vmul.f32 %v21_v3, %v16_v5 }
  0x87   :  { %v29_v8 = vpop.permute.xlu0 %28 }
  0x88   :  { %v31_v9 = vadd.f32 %v29_v8, %v23_v6  ;;  %v32_v10 = vadd.f32 %v29_v8, %v24_v7 }
  0x8a   :  { %33 = vst [vmem:[#allocation2] sm:$0xff] %v31_v9  ;;  %34 = vst [vmem:[#allocation2 + $0x8] sm:$0xff] %v32_v10 }
  0x8b   :  { %63 = shalt.err (!%p60_p4)
}
  0x8c   :  { %s64_s0 = scalar_lea.hbm %s125_s3, 256 }
  0x8d   :  { %p65_p5 = scmp.ne.s32.totalorder %s125_s3, %s64_s0  ;;  %p68_p6 = scmp.lt.u32.totalorder %s64_s0, %s125_s3 }
  0x8f   :  { %p70_p7 = pnand %p68_p6, %p65_p5 }
  0x91   :  { %73 = shalt.err (!%p70_p7)
}
  0x92   :  { %44 = dma.vmem_to_hbm [thread:$0]  %s42_s1, 256, %s125_s3, [#allocation3]  }
  0x93   :  { %74 = dma.done.wait [#allocation3], 256  }
  0x94   :  { %75 = vsyncadd [#allocation3], 4294967040 }
  0x95   :  { %48 = vsyncpa [#allocation3], 1 }

</bundles_post_ra>
